<compile_context>
chip_gen: v6e
topology: v6e:2x2x1
jax: 0.10.0
libtpu: 0.0.40
codegen_flags: <defaults>
</compile_context>

<pallas_src>
import functools
import math

import jax
import jax.numpy as jnp
from jax.experimental import pallas as pl
from jax.experimental.pallas import tpu as pltpu

SMOOTH = 1e-4   # `smooth` in Attention.forward
EPS = 1e-6      # LayerNorm eps


# ------------------------- small helpers -------------------------

def _pick_tile(dim, preferred, align):
    """Largest multiple of `align` that divides `dim` and is <= preferred; else dim."""
    if dim <= preferred:
        return dim
    t = (preferred // align) * align
    while t >= align:
        if dim % t == 0:
            return t
        t -= align
    return dim


def _cost(flops, bytes_accessed, transcendentals=0):
    return pl.CostEstimate(flops=int(flops),
                           transcendentals=int(transcendentals),
                           bytes_accessed=int(bytes_accessed))


def _mosaic(sem, block_bytes_hint=0):
    """CompilerParams; only raise the scoped VMEM limit when the tiles demand it."""
    kwargs = dict(dimension_semantics=sem)
    if block_bytes_hint > (16 << 20):
        kwargs["vmem_limit_bytes"] = int(min(block_bytes_hint + (4 << 20), 64 << 20))
    return pltpu.CompilerParams(**kwargs)


# ------------------------- kernel 1: LayerNorm + fused QKV -------------------------
# qkv3[p*H + h, b, n, :] = LayerNorm(x)[b, n, :] @ W_p[:, h*dh:(h+1)*dh] + b_p[h*dh:(h+1)*dh]

def _ln_qkv_kernel(x_ref, g_ref, bln_ref, w_ref, b_ref, o_ref):
    xb = x_ref[0]                                       # (TT, D)
    mu = jnp.mean(xb, axis=-1, keepdims=True)
    var = jnp.mean((xb - mu) ** 2, axis=-1, keepdims=True)   # biased var (torch LN)
    xn = (xb - mu) * jax.lax.rsqrt(var + EPS) * g_ref[...] + bln_ref[...]
    G = w_ref.shape[0]
    for g in range(G):                                  # static loop over (proj, head) groups
        y = jnp.dot(xn, w_ref[g], preferred_element_type=jnp.float32) + b_ref[g]
        o_ref[g, 0] = y.astype(o_ref.dtype)


def ln_qkv(x, gamma, beta, w3, b3):
    B, N, D = x.shape
    G, _, dh = w3.shape                      # G = 3*H
    TT = _pick_tile(N, 256, 8)
    cost = _cost(flops=2 * B * N * D * G * dh,
                 bytes_accessed=4 * (B * N * D + G * D * dh + G * dh
                                     + G * B * N * dh + 2 * D),
                 transcendentals=B * N)
    return pl.pallas_call(
        _ln_qkv_kernel,
        out_shape=jax.ShapeDtypeStruct((G, B, N, dh), x.dtype),
        grid=(B, N // TT),
        in_specs=[
            pl.BlockSpec((1, TT, D), lambda b, t: (b, t, 0)),
            pl.BlockSpec((1, D), lambda b, t: (0, 0)),
            pl.BlockSpec((1, D), lambda b, t: (0, 0)),
            pl.BlockSpec((G, D, dh), lambda b, t: (0, 0, 0)),   # constant index: resident weights
            pl.BlockSpec((G, 1, dh), lambda b, t: (0, 0, 0)),
        ],
        out_specs=pl.BlockSpec((G, 1, TT, dh), lambda b, t: (0, b, t, 0)),
        compiler_params=_mosaic(("parallel", "parallel"),
                                4 * 2 * (TT * D + G * D * dh + G * dh + G * TT * dh + 2 * D)),
        cost_estimate=cost,
    )(x, gamma.reshape(1, D), beta.reshape(1, D), w3, b3)


# ------------------------- kernel 2: attention core -------------------------

def _attn_kernel(q_ref, k_ref, v_ref, dis_ref, ctx_ref, probs_ref):
    q = q_ref[0, 0]                                    # (N, dh)
    k = k_ref[0, 0]
    v = v_ref[0, 0]
    d = dis_ref[0]                                     # (N, N) normalized prior
    dn = (((1,), (1,)), ((), ()))                      # contract last dims -> a @ b^T
    scores = jax.lax.dot_general(q, k, dn, preferred_element_type=jnp.float32)  # (N, N)

    # cosine denominator: |q| column (XLU reduce) x |k| row (ones-vector MXU matmul)
    qn = jnp.sqrt(jnp.sum(q * q, axis=-1, keepdims=True) + SMOOTH)              # (N, 1)
    ones_row = jnp.ones((1, q.shape[-1]), jnp.float32)
    kn_sq = jax.lax.dot_general(ones_row, k * k, dn,
                                preferred_element_type=jnp.float32)             # (1, N)
    kn = jnp.sqrt(kn_sq + SMOOTH)
    denom = qn * kn + SMOOTH                           # VPU outer product (no K=1 MXU matmul)

    probs = scores * pl.reciprocal(denom) * d          # EUP reciprocal, VPU multiplies
    probs_ref[0, 0] = probs.astype(probs_ref.dtype)
    ctx_ref[0, 0] = jnp.dot(probs, v, preferred_element_type=jnp.float32).astype(ctx_ref.dtype)


def attention_core(qkv3, dis_norm, num_heads):
    G, B, N, dh = qkv3.shape
    H = num_heads
    cost = _cost(flops=4 * B * H * N * N * dh + 2 * B * H * N * dh + 3 * B * H * N * N,
                 bytes_accessed=4 * (G * B * N * dh + H * N * N
                                     + B * H * N * N + H * B * N * dh),
                 transcendentals=B * H * (N * N + 2 * N))
    return pl.pallas_call(
        _attn_kernel,
        out_shape=(jax.ShapeDtypeStruct((H, B, N, dh), qkv3.dtype),
                   jax.ShapeDtypeStruct((B, H, N, N), qkv3.dtype)),
        grid=(H, B),                         # H outermost: prior block not re-DMA'd as b varies
        in_specs=[
            pl.BlockSpec((1, 1, N, dh), lambda h, b: (h, b, 0, 0)),           # q
            pl.BlockSpec((1, 1, N, dh), lambda h, b: (H + h, b, 0, 0)),       # k
            pl.BlockSpec((1, 1, N, dh), lambda h, b: (2 * H + h, b, 0, 0)),   # v
            pl.BlockSpec((1, N, N), lambda h, b: (h, 0, 0)),                  # distance prior
        ],
        out_specs=(pl.BlockSpec((1, 1, N, dh), lambda h, b: (h, b, 0, 0)),
                   pl.BlockSpec((1, 1, N, N), lambda h, b: (b, h, 0, 0))),
        compiler_params=_mosaic(("parallel", "parallel"),
                                4 * 2 * (3 * N * dh + 2 * N * N + N * dh)),
        cost_estimate=cost,
    )(qkv3, qkv3, qkv3, dis_norm)


# ------------------------- kernel 3: output projection + bias + residual -------------------------
# out[b, n, :] = sum_h ctx[h, b, n, :] @ Wo[h*dh:(h+1)*dh, :] + bo + residual[b, n, :]

def _outproj_kernel(ctx_ref, w_ref, b_ref, res_ref, o_ref):
    acc = res_ref[0] + b_ref[0]                        # (TT, TD) init: residual + bias
    H = ctx_ref.shape[0]
    for h in range(H):                                 # static head loop, acc stays in vregs
        acc = acc + jnp.dot(ctx_ref[h, 0], w_ref[h], preferred_element_type=jnp.float32)
    o_ref[0] = acc.astype(o_ref.dtype)


def out_proj_residual(ctx3, wo3, bo, residual):
    H, B, N, dh = ctx3.shape
    D = wo3.shape[-1]
    TT = _pick_tile(N, 256, 8)
    TD = _pick_tile(D, 512, 128)
    cost = _cost(flops=2 * B * N * dh * H * D,
                 bytes_accessed=4 * (H * B * N * dh + H * dh * D + D + 2 * B * N * D))
    return pl.pallas_call(
        _outproj_kernel,
        out_shape=jax.ShapeDtypeStruct((B, N, D), ctx3.dtype),
        grid=(B, N // TT, D // TD),
        in_specs=[
            pl.BlockSpec((H, 1, TT, dh), lambda b, t, d: (0, b, t, 0)),
            pl.BlockSpec((H, dh, TD), lambda b, t, d: (0, 0, d)),
            pl.BlockSpec((1, 1, TD), lambda b, t, d: (0, 0, d)),
            pl.BlockSpec((1, TT, TD), lambda b, t, d: (b, t, d)),
        ],
        out_specs=pl.BlockSpec((1, TT, TD), lambda b, t, d: (b, t, d)),
        compiler_params=_mosaic(("parallel", "parallel", "parallel"),
                                4 * 2 * (H * TT * dh + H * dh * TD + TD + 2 * TT * TD)),
        cost_estimate=cost,
    )(ctx3, wo3, bo, residual)


# ------------------------- kernel 4: LayerNorm + linear (+ exact GELU) -------------------------

def _ln_linear_kernel(x_ref, g_ref, bln_ref, w_ref, b_ref, o_ref, *, activation):
    xb = x_ref[...]                                    # (TM, D)
    mu = jnp.mean(xb, axis=-1, keepdims=True)
    var = jnp.mean((xb - mu) ** 2, axis=-1, keepdims=True)
    xn = (xb - mu) * jax.lax.rsqrt(var + EPS) * g_ref[...] + bln_ref[...]
    y = jnp.dot(xn, w_ref[...], preferred_element_type=jnp.float32) + b_ref[...]
    if activation == "gelu":
        # exact (erf-based) GELU, matching torch.nn.functional.gelu default
        y = 0.5 * y * (1.0 + jax.lax.erf(y * (1.0 / math.sqrt(2.0))))
    o_ref[...] = y.astype(o_ref.dtype)


def ln_linear(x2d, gamma, beta, w, b, activation=None):
    M, D = x2d.shape
    _, Nout = w.shape
    TM = _pick_tile(M, 256, 8)
    TN = _pick_tile(Nout, 512, 128)
    kern = functools.partial(_ln_linear_kernel, activation=activation)
    trans = M * Nout if activation == "gelu" else 0
    cost = _cost(flops=2 * M * D * Nout,
                 bytes_accessed=4 * (M * D + D * Nout + Nout + M * Nout + 2 * D),
                 transcendentals=M + trans)
    return pl.pallas_call(
        kern,
        out_shape=jax.ShapeDtypeStruct((M, Nout), x2d.dtype),
        grid=(M // TM, Nout // TN),
        in_specs=[
            pl.BlockSpec((TM, D), lambda i, j: (i, 0)),
            pl.BlockSpec((1, D), lambda i, j: (0, 0)),
            pl.BlockSpec((1, D), lambda i, j: (0, 0)),
            pl.BlockSpec((D, TN), lambda i, j: (0, j)),
            pl.BlockSpec((1, TN), lambda i, j: (0, j)),
        ],
        out_specs=pl.BlockSpec((TM, TN), lambda i, j: (i, j)),
        compiler_params=_mosaic(("parallel", "parallel"),
                                4 * 2 * (TM * D + D * TN + TN + TM * TN)),
        cost_estimate=cost,
    )(x2d, gamma.reshape(1, D), beta.reshape(1, D), w, b.reshape(1, Nout))


# ------------------------- kernel 5: linear + bias + residual -------------------------

def _linear_residual_kernel(x_ref, w_ref, b_ref, res_ref, o_ref):
    y = jnp.dot(x_ref[...], w_ref[...], preferred_element_type=jnp.float32)
    o_ref[...] = (y + b_ref[...] + res_ref[...]).astype(o_ref.dtype)


def linear_residual(x2d, w, b, residual2d):
    M, K = x2d.shape
    _, Nout = w.shape
    TM = _pick_tile(M, 256, 8)
    TN = _pick_tile(Nout, 512, 128)
    cost = _cost(flops=2 * M * K * Nout,
                 bytes_accessed=4 * (M * K + K * Nout + Nout + 2 * M * Nout))
    return pl.pallas_call(
        _linear_residual_kernel,
        out_shape=jax.ShapeDtypeStruct((M, Nout), x2d.dtype),
        grid=(M // TM, Nout // TN),
        in_specs=[
            pl.BlockSpec((TM, K), lambda i, j: (i, 0)),
            pl.BlockSpec((K, TN), lambda i, j: (0, j)),
            pl.BlockSpec((1, TN), lambda i, j: (0, j)),
            pl.BlockSpec((TM, TN), lambda i, j: (i, j)),
        ],
        out_specs=pl.BlockSpec((TM, TN), lambda i, j: (i, j)),
        compiler_params=_mosaic(("parallel", "parallel"),
                                4 * 2 * (TM * K + K * TN + TN + 2 * TM * TN)),
        cost_estimate=cost,
    )(x2d, w, b.reshape(1, Nout), residual2d)


# ------------------------- glue / forward -------------------------

def relative_pos_dis_jax(height, width):
    """Port of relative_pos_dis (height/width are sqrt(num_patches), may be float)."""
    hs = jnp.arange(int(height))
    ws = jnp.arange(int(width))
    ch, cw = jnp.meshgrid(hs, ws, indexing="ij")
    coords = jnp.stack([ch, cw]).reshape(2, -1)               # (2, N)
    rel = coords[:, :, None] - coords[:, None, :]             # (2, N, N)
    rel = jnp.transpose(rel, (1, 2, 0)).astype(jnp.float32)
    dis = (rel[:, :, 0] / height) ** 2 + (rel[:, :, 1] / width) ** 2
    return dis                                                # (N, N)


def block_forward(x, params):
    B, N, D = x.shape
    H = params["num_heads"]
    dh = D // H

    # ---- attention branch (LN + fused QKV, heads sliced purely via BlockSpecs) ----
    # Weight-side repack (one-time, parameter-sized): group columns per (proj, head).
    w3 = (jnp.stack([params["wq"], params["wk"], params["wv"]], axis=0)
          .reshape(3, D, H, dh).transpose(0, 2, 1, 3).reshape(3 * H, D, dh))
    b3 = jnp.stack([params["bq"], params["bk"], params["bv"]], axis=0).reshape(3 * H, 1, dh)

    qkv3 = ln_qkv(x, params["attn_norm_g"], params["attn_norm_b"], w3, b3)    # (3H, B, N, dh)

    # learned relative-distance prior (cheap parameter-sized glue)
    factor = 1.0 / (2.0 * (jax.nn.sigmoid(params["headsita"]) * (0.4 - 0.003) + 0.003) ** 2)
    dis = jnp.exp(-factor[:, None, None] * params["dis"][None, :, :])
    dis_norm = dis / jnp.sum(dis, axis=-1, keepdims=True)                     # (H, N, N)

    ctx3, weights = attention_core(qkv3, dis_norm, H)           # (H,B,N,dh), (B,H,N,N)

    wo3 = params["wo"].reshape(H, dh, D)                        # split "in" axis per head
    attn_x = out_proj_residual(ctx3, wo3, params["bo"].reshape(1, 1, D), x)   # ctx@Wo + bo + x

    # ---- MLP branch (LN + fc1 + GELU fused; fc2 + bias + residual fused) ----
    a2 = attn_x.reshape(B * N, D)
    hmid = ln_linear(a2, params["ffn_norm_g"], params["ffn_norm_b"],
                     params["w1"], params["b1"], activation="gelu")
    out = linear_residual(hmid, params["w2"], params["b2"], a2).reshape(B, N, D)
    return out, weights


# ------------------------- pure-JAX reference -------------------------

def block_forward_ref(x, params):
    B, N, D = x.shape
    H = params["num_heads"]
    dh = D // H

    def ln(t, g, b):
        mu = jnp.mean(t, -1, keepdims=True)
        var = jnp.mean((t - mu) ** 2, -1, keepdims=True)
        return (t - mu) / jnp.sqrt(var + EPS) * g + b

    h = x
    xn = ln(x, params["attn_norm_g"], params["attn_norm_b"])
    q = xn @ params["wq"] + params["bq"]
    k = xn @ params["wk"] + params["bk"]
    v = xn @ params["wv"] + params["bv"]

    def sh(t):
        return t.reshape(B, N, H, dh).transpose(0, 2, 1, 3)

    qh, kh, vh = sh(q), sh(k), sh(v)
    scores = jnp.einsum("bhqd,bhkd->bhqk", qh, kh)
    qn = jnp.sqrt(jnp.sum(qh ** 2, -1) + SMOOTH)
    kn = jnp.sqrt(jnp.sum(kh ** 2, -1) + SMOOTH)
    qk_norm = qn[..., :, None] * kn[..., None, :] + SMOOTH
    probs = scores / qk_norm
    factor = 1.0 / (2.0 * (jax.nn.sigmoid(params["headsita"]) * (0.4 - 0.003) + 0.003) ** 2)
    dis = jnp.exp(-factor[:, None, None] * params["dis"][None])
    dis = dis / jnp.sum(dis, -1, keepdims=True)
    probs = probs * dis[None]
    ctx = jnp.einsum("bhqk,bhkd->bhqd", probs, vh)
    ctx = ctx.transpose(0, 2, 1, 3).reshape(B, N, D)
    x = ctx @ params["wo"] + params["bo"] + h

    h = x
    xn = ln(x, params["ffn_norm_g"], params["ffn_norm_b"])
    y = jax.nn.gelu(xn @ params["w1"] + params["b1"], approximate=False)
    y = y @ params["w2"] + params["b2"]
    return y + h, probs


# ------------------------- main -------------------------

if __name__ == "__main__":
    # Small config: hidden=32, heads=4, mlp_dim=64, num_patches=16 (4x4 grid), batch=2.
    B, N, D, H, MLP = 2, 16, 32, 4, 64
    key = jax.random.PRNGKey(0)
    ks = jax.random.split(key, 14)

    params = {
        "num_heads": H,
        "attn_norm_g": jnp.ones((D,), jnp.float32),
        "attn_norm_b": jnp.zeros((D,), jnp.float32),
        "ffn_norm_g": jnp.ones((D,), jnp.float32),
        "ffn_norm_b": jnp.zeros((D,), jnp.float32),
        # Linear weights stored as (in, out) = torch weight.T
        "wq": jax.random.normal(ks[0], (D, D), jnp.float32) * 0.05,
        "bq": jax.random.normal(ks[1], (D,), jnp.float32) * 0.01,
        "wk": jax.random.normal(ks[2], (D, D), jnp.float32) * 0.05,
        "bk": jax.random.normal(ks[3], (D,), jnp.float32) * 0.01,
        "wv": jax.random.normal(ks[4], (D, D), jnp.float32) * 0.05,
        "bv": jax.random.normal(ks[5], (D,), jnp.float32) * 0.01,
        "wo": jax.random.normal(ks[6], (D, D), jnp.float32) * 0.05,
        "bo": jax.random.normal(ks[7], (D,), jnp.float32) * 0.01,
        "w1": jax.random.normal(ks[8], (D, MLP), jnp.float32) * 0.05,
        "b1": jax.random.normal(ks[9], (MLP,), jnp.float32) * 1e-6,
        "w2": jax.random.normal(ks[10], (MLP, D), jnp.float32) * 0.05,
        "b2": jax.random.normal(ks[11], (D,), jnp.float32) * 1e-6,
        "headsita": jax.random.normal(ks[12], (H,), jnp.float32),
        "dis": relative_pos_dis_jax(math.sqrt(N), math.sqrt(N)),
    }

    x = jax.random.normal(ks[13], (B, N, D), jnp.float32)

    out, weights = block_forward(x, params)
    out = jax.block_until_ready(out)
    weights = jax.block_until_ready(weights)

    ref_out, ref_w = block_forward_ref(x, params)
    assert out.shape == (B, N, D) and weights.shape == (B, H, N, N)
    assert jnp.allclose(out, ref_out, rtol=1e-4, atol=1e-4), "output mismatch"
    assert jnp.allclose(weights, ref_w, rtol=1e-4, atol=1e-4), "attention-weights mismatch"

    print("KERNEL_OK")
</pallas_src>

<mosaic_0001>
module attributes {stable_mosaic.version = 11 : i64} {
  func.func @_ln_qkv_kernel(%arg0: i32, %arg1: i32, %arg2: memref<1x16x32xf32, #tpu.memory_space<vmem>>, %arg3: memref<1x32xf32, #tpu.memory_space<vmem>>, %arg4: memref<1x32xf32, #tpu.memory_space<vmem>>, %arg5: memref<12x32x8xf32, #tpu.memory_space<vmem>>, %arg6: memref<12x1x8xf32, #tpu.memory_space<vmem>>, %arg7: memref<12x1x16x8xf32, #tpu.memory_space<vmem>>) attributes {dimension_semantics = [#tpu.dimension_semantics<parallel>, #tpu.dimension_semantics<parallel>], iteration_bounds = array<i64: 2, 1>, scalar_prefetch = 0 : i64, scratch_operands = 0 : i64, tpu.core_type = #tpu.core_type<tc>, window_params = [{transform_indices = @transform_0, window_bounds = array<i64: 1, 16, 32>}, {pipeline_mode = #tpu.pipeline_mode<synchronous>, transform_indices = @transform_1, window_bounds = array<i64: 1, 32>}, {pipeline_mode = #tpu.pipeline_mode<synchronous>, transform_indices = @transform_2, window_bounds = array<i64: 1, 32>}, {pipeline_mode = #tpu.pipeline_mode<synchronous>, transform_indices = @transform_3, window_bounds = array<i64: 12, 32, 8>}, {pipeline_mode = #tpu.pipeline_mode<synchronous>, transform_indices = @transform_4, window_bounds = array<i64: 12, 1, 8>}, {transform_indices = @transform_5, window_bounds = array<i64: 12, 1, 16, 8>}]} {
    %c0 = arith.constant 0 : index
    %c0_0 = arith.constant 0 : index
    %c0_1 = arith.constant 0 : index
    %0 = vector.load %arg2[%c0, %c0_0, %c0_1] : memref<1x16x32xf32, #tpu.memory_space<vmem>>, vector<1x16x32xf32>
    %1 = vector.shape_cast %0 : vector<1x16x32xf32> to vector<16x32xf32>
    %cst = arith.constant dense<0.000000e+00> : vector<16xf32>
    %2 = vector.multi_reduction <add>, %1, %cst [1] : vector<16x32xf32> to vector<16xf32>
    %3 = vector.shape_cast %2 : vector<16xf32> to vector<16x1xf32>
    %cst_2 = arith.constant 3.200000e+01 : f32
    %4 = vector.broadcast %cst_2 : f32 to vector<16x1xf32>
    %5 = arith.divf %3, %4 : vector<16x1xf32>
    %6 = vector.broadcast %5 : vector<16x1xf32> to vector<16x32xf32>
    %7 = arith.subf %1, %6 : vector<16x32xf32>
    %8 = arith.mulf %7, %7 : vector<16x32xf32>
    %cst_3 = arith.constant dense<0.000000e+00> : vector<16xf32>
    %9 = vector.multi_reduction <add>, %8, %cst_3 [1] : vector<16x32xf32> to vector<16xf32>
    %10 = vector.shape_cast %9 : vector<16xf32> to vector<16x1xf32>
    %cst_4 = arith.constant 3.200000e+01 : f32
    %11 = vector.broadcast %cst_4 : f32 to vector<16x1xf32>
    %12 = arith.divf %10, %11 : vector<16x1xf32>
    %13 = vector.broadcast %5 : vector<16x1xf32> to vector<16x32xf32>
    %14 = arith.subf %1, %13 : vector<16x32xf32>
    %cst_5 = arith.constant 9.99999997E-7 : f32
    %15 = vector.broadcast %cst_5 : f32 to vector<16x1xf32>
    %16 = arith.addf %12, %15 : vector<16x1xf32>
    %17 = math.rsqrt %16 : vector<16x1xf32>
    %18 = vector.broadcast %17 : vector<16x1xf32> to vector<16x32xf32>
    %19 = arith.mulf %14, %18 : vector<16x32xf32>
    %c0_6 = arith.constant 0 : index
    %c0_7 = arith.constant 0 : index
    %20 = vector.load %arg3[%c0_6, %c0_7] : memref<1x32xf32, #tpu.memory_space<vmem>>, vector<1x32xf32>
    %21 = vector.broadcast %20 : vector<1x32xf32> to vector<16x32xf32>
    %22 = arith.mulf %19, %21 : vector<16x32xf32>
    %c0_8 = arith.constant 0 : index
    %c0_9 = arith.constant 0 : index
    %23 = vector.load %arg4[%c0_8, %c0_9] : memref<1x32xf32, #tpu.memory_space<vmem>>, vector<1x32xf32>
    %24 = vector.broadcast %23 : vector<1x32xf32> to vector<16x32xf32>
    %25 = arith.addf %22, %24 : vector<16x32xf32>
    %c0_10 = arith.constant 0 : index
    %c0_11 = arith.constant 0 : index
    %c0_12 = arith.constant 0 : index
    %26 = vector.load %arg5[%c0_10, %c0_11, %c0_12] : memref<12x32x8xf32, #tpu.memory_space<vmem>>, vector<1x32x8xf32>
    %27 = vector.shape_cast %26 : vector<1x32x8xf32> to vector<32x8xf32>
    %cst_13 = arith.constant dense<0.000000e+00> : vector<16x8xf32>
    %28 = tpu.matmul %25, %27, %cst_13 {dimension_numbers = #tpu.dot_dimension_numbers<[1], [0], [0], [1], [0, 0, 1, 1], [], []>} : vector<16x32xf32>, vector<32x8xf32>, vector<16x8xf32> -> vector<16x8xf32>
    %c0_14 = arith.constant 0 : index
    %c0_15 = arith.constant 0 : index
    %c0_16 = arith.constant 0 : index
    %29 = vector.load %arg6[%c0_14, %c0_15, %c0_16] : memref<12x1x8xf32, #tpu.memory_space<vmem>>, vector<1x1x8xf32>
    %30 = vector.shape_cast %29 : vector<1x1x8xf32> to vector<1x8xf32>
    %31 = vector.broadcast %30 : vector<1x8xf32> to vector<16x8xf32>
    %32 = arith.addf %28, %31 : vector<16x8xf32>
    %c0_17 = arith.constant 0 : index
    %c0_18 = arith.constant 0 : index
    %c0_19 = arith.constant 0 : index
    %c0_20 = arith.constant 0 : index
    %33 = vector.load %arg7[%c0_17, %c0_18, %c0_19, %c0_20] : memref<12x1x16x8xf32, #tpu.memory_space<vmem>>, vector<1x1x16x8xf32>
    %34 = vector.shape_cast %33 : vector<1x1x16x8xf32> to vector<16x8xf32>
    %35 = vector.shape_cast %32 : vector<16x8xf32> to vector<1x1x16x8xf32>
    tpu.vector_store %arg7[%c0_17, %c0_18, %c0_19, %c0_20], %35 {strides = array<i32>} : memref<12x1x16x8xf32, #tpu.memory_space<vmem>>, vector<1x1x16x8xf32>,
    %c1 = arith.constant 1 : index
    %c0_21 = arith.constant 0 : index
    %c0_22 = arith.constant 0 : index
    %36 = vector.load %arg5[%c1, %c0_21, %c0_22] : memref<12x32x8xf32, #tpu.memory_space<vmem>>, vector<1x32x8xf32>
    %37 = vector.shape_cast %36 : vector<1x32x8xf32> to vector<32x8xf32>
    %cst_23 = arith.constant dense<0.000000e+00> : vector<16x8xf32>
    %38 = tpu.matmul %25, %37, %cst_23 {dimension_numbers = #tpu.dot_dimension_numbers<[1], [0], [0], [1], [0, 0, 1, 1], [], []>} : vector<16x32xf32>, vector<32x8xf32>, vector<16x8xf32> -> vector<16x8xf32>
    %c1_24 = arith.constant 1 : index
    %c0_25 = arith.constant 0 : index
    %c0_26 = arith.constant 0 : index
    %39 = vector.load %arg6[%c1_24, %c0_25, %c0_26] : memref<12x1x8xf32, #tpu.memory_space<vmem>>, vector<1x1x8xf32>
    %40 = vector.shape_cast %39 : vector<1x1x8xf32> to vector<1x8xf32>
    %41 = vector.broadcast %40 : vector<1x8xf32> to vector<16x8xf32>
    %42 = arith.addf %38, %41 : vector<16x8xf32>
    %c1_27 = arith.constant 1 : index
    %c0_28 = arith.constant 0 : index
    %c0_29 = arith.constant 0 : index
    %c0_30 = arith.constant 0 : index
    %43 = vector.load %arg7[%c1_27, %c0_28, %c0_29, %c0_30] : memref<12x1x16x8xf32, #tpu.memory_space<vmem>>, vector<1x1x16x8xf32>
    %44 = vector.shape_cast %43 : vector<1x1x16x8xf32> to vector<16x8xf32>
    %45 = vector.shape_cast %42 : vector<16x8xf32> to vector<1x1x16x8xf32>
    tpu.vector_store %arg7[%c1_27, %c0_28, %c0_29, %c0_30], %45 {strides = array<i32>} : memref<12x1x16x8xf32, #tpu.memory_space<vmem>>, vector<1x1x16x8xf32>,
    %c2 = arith.constant 2 : index
    %c0_31 = arith.constant 0 : index
    %c0_32 = arith.constant 0 : index
    %46 = vector.load %arg5[%c2, %c0_31, %c0_32] : memref<12x32x8xf32, #tpu.memory_space<vmem>>, vector<1x32x8xf32>
    %47 = vector.shape_cast %46 : vector<1x32x8xf32> to vector<32x8xf32>
    %cst_33 = arith.constant dense<0.000000e+00> : vector<16x8xf32>
    %48 = tpu.matmul %25, %47, %cst_33 {dimension_numbers = #tpu.dot_dimension_numbers<[1], [0], [0], [1], [0, 0, 1, 1], [], []>} : vector<16x32xf32>, vector<32x8xf32>, vector<16x8xf32> -> vector<16x8xf32>
    %c2_34 = arith.constant 2 : index
    %c0_35 = arith.constant 0 : index
    %c0_36 = arith.constant 0 : index
    %49 = vector.load %arg6[%c2_34, %c0_35, %c0_36] : memref<12x1x8xf32, #tpu.memory_space<vmem>>, vector<1x1x8xf32>
    %50 = vector.shape_cast %49 : vector<1x1x8xf32> to vector<1x8xf32>
    %51 = vector.broadcast %50 : vector<1x8xf32> to vector<16x8xf32>
    %52 = arith.addf %48, %51 : vector<16x8xf32>
    %c2_37 = arith.constant 2 : index
    %c0_38 = arith.constant 0 : index
    %c0_39 = arith.constant 0 : index
    %c0_40 = arith.constant 0 : index
    %53 = vector.load %arg7[%c2_37, %c0_38, %c0_39, %c0_40] : memref<12x1x16x8xf32, #tpu.memory_space<vmem>>, vector<1x1x16x8xf32>
    %54 = vector.shape_cast %53 : vector<1x1x16x8xf32> to vector<16x8xf32>
    %55 = vector.shape_cast %52 : vector<16x8xf32> to vector<1x1x16x8xf32>
    tpu.vector_store %arg7[%c2_37, %c0_38, %c0_39, %c0_40], %55 {strides = array<i32>} : memref<12x1x16x8xf32, #tpu.memory_space<vmem>>, vector<1x1x16x8xf32>,
    %c3 = arith.constant 3 : index
    %c0_41 = arith.constant 0 : index
    %c0_42 = arith.constant 0 : index
    %56 = vector.load %arg5[%c3, %c0_41, %c0_42] : memref<12x32x8xf32, #tpu.memory_space<vmem>>, vector<1x32x8xf32>
    %57 = vector.shape_cast %56 : vector<1x32x8xf32> to vector<32x8xf32>
    %cst_43 = arith.constant dense<0.000000e+00> : vector<16x8xf32>
    %58 = tpu.matmul %25, %57, %cst_43 {dimension_numbers = #tpu.dot_dimension_numbers<[1], [0], [0], [1], [0, 0, 1, 1], [], []>} : vector<16x32xf32>, vector<32x8xf32>, vector<16x8xf32> -> vector<16x8xf32>
    %c3_44 = arith.constant 3 : index
    %c0_45 = arith.constant 0 : index
    %c0_46 = arith.constant 0 : index
    %59 = vector.load %arg6[%c3_44, %c0_45, %c0_46] : memref<12x1x8xf32, #tpu.memory_space<vmem>>, vector<1x1x8xf32>
    %60 = vector.shape_cast %59 : vector<1x1x8xf32> to vector<1x8xf32>
    %61 = vector.broadcast %60 : vector<1x8xf32> to vector<16x8xf32>
    %62 = arith.addf %58, %61 : vector<16x8xf32>
    %c3_47 = arith.constant 3 : index
    %c0_48 = arith.constant 0 : index
    %c0_49 = arith.constant 0 : index
    %c0_50 = arith.constant 0 : index
    %63 = vector.load %arg7[%c3_47, %c0_48, %c0_49, %c0_50] : memref<12x1x16x8xf32, #tpu.memory_space<vmem>>, vector<1x1x16x8xf32>
    %64 = vector.shape_cast %63 : vector<1x1x16x8xf32> to vector<16x8xf32>
    %65 = vector.shape_cast %62 : vector<16x8xf32> to vector<1x1x16x8xf32>
    tpu.vector_store %arg7[%c3_47, %c0_48, %c0_49, %c0_50], %65 {strides = array<i32>} : memref<12x1x16x8xf32, #tpu.memory_space<vmem>>, vector<1x1x16x8xf32>,
    %c4 = arith.constant 4 : index
    %c0_51 = arith.constant 0 : index
    %c0_52 = arith.constant 0 : index
    %66 = vector.load %arg5[%c4, %c0_51, %c0_52] : memref<12x32x8xf32, #tpu.memory_space<vmem>>, vector<1x32x8xf32>
    %67 = vector.shape_cast %66 : vector<1x32x8xf32> to vector<32x8xf32>
    %cst_53 = arith.constant dense<0.000000e+00> : vector<16x8xf32>
    %68 = tpu.matmul %25, %67, %cst_53 {dimension_numbers = #tpu.dot_dimension_numbers<[1], [0], [0], [1], [0, 0, 1, 1], [], []>} : vector<16x32xf32>, vector<32x8xf32>, vector<16x8xf32> -> vector<16x8xf32>
    %c4_54 = arith.constant 4 : index
    %c0_55 = arith.constant 0 : index
    %c0_56 = arith.constant 0 : index
    %69 = vector.load %arg6[%c4_54, %c0_55, %c0_56] : memref<12x1x8xf32, #tpu.memory_space<vmem>>, vector<1x1x8xf32>
    %70 = vector.shape_cast %69 : vector<1x1x8xf32> to vector<1x8xf32>
    %71 = vector.broadcast %70 : vector<1x8xf32> to vector<16x8xf32>
    %72 = arith.addf %68, %71 : vector<16x8xf32>
    %c4_57 = arith.constant 4 : index
    %c0_58 = arith.constant 0 : index
    %c0_59 = arith.constant 0 : index
    %c0_60 = arith.constant 0 : index
    %73 = vector.load %arg7[%c4_57, %c0_58, %c0_59, %c0_60] : memref<12x1x16x8xf32, #tpu.memory_space<vmem>>, vector<1x1x16x8xf32>
    %74 = vector.shape_cast %73 : vector<1x1x16x8xf32> to vector<16x8xf32>
    %75 = vector.shape_cast %72 : vector<16x8xf32> to vector<1x1x16x8xf32>
    tpu.vector_store %arg7[%c4_57, %c0_58, %c0_59, %c0_60], %75 {strides = array<i32>} : memref<12x1x16x8xf32, #tpu.memory_space<vmem>>, vector<1x1x16x8xf32>,
    %c5 = arith.constant 5 : index
    %c0_61 = arith.constant 0 : index
    %c0_62 = arith.constant 0 : index
    %76 = vector.load %arg5[%c5, %c0_61, %c0_62] : memref<12x32x8xf32, #tpu.memory_space<vmem>>, vector<1x32x8xf32>
    %77 = vector.shape_cast %76 : vector<1x32x8xf32> to vector<32x8xf32>
    %cst_63 = arith.constant dense<0.000000e+00> : vector<16x8xf32>
    %78 = tpu.matmul %25, %77, %cst_63 {dimension_numbers = #tpu.dot_dimension_numbers<[1], [0], [0], [1], [0, 0, 1, 1], [], []>} : vector<16x32xf32>, vector<32x8xf32>, vector<16x8xf32> -> vector<16x8xf32>
    %c5_64 = arith.constant 5 : index
    %c0_65 = arith.constant 0 : index
    %c0_66 = arith.constant 0 : index
    %79 = vector.load %arg6[%c5_64, %c0_65, %c0_66] : memref<12x1x8xf32, #tpu.memory_space<vmem>>, vector<1x1x8xf32>
    %80 = vector.shape_cast %79 : vector<1x1x8xf32> to vector<1x8xf32>
    %81 = vector.broadcast %80 : vector<1x8xf32> to vector<16x8xf32>
    %82 = arith.addf %78, %81 : vector<16x8xf32>
    %c5_67 = arith.constant 5 : index
    %c0_68 = arith.constant 0 : index
    %c0_69 = arith.constant 0 : index
    %c0_70 = arith.constant 0 : index
    %83 = vector.load %arg7[%c5_67, %c0_68, %c0_69, %c0_70] : memref<12x1x16x8xf32, #tpu.memory_space<vmem>>, vector<1x1x16x8xf32>
    %84 = vector.shape_cast %83 : vector<1x1x16x8xf32> to vector<16x8xf32>
    %85 = vector.shape_cast %82 : vector<16x8xf32> to vector<1x1x16x8xf32>
    tpu.vector_store %arg7[%c5_67, %c0_68, %c0_69, %c0_70], %85 {strides = array<i32>} : memref<12x1x16x8xf32, #tpu.memory_space<vmem>>, vector<1x1x16x8xf32>,
    %c6 = arith.constant 6 : index
    %c0_71 = arith.constant 0 : index
    %c0_72 = arith.constant 0 : index
    %86 = vector.load %arg5[%c6, %c0_71, %c0_72] : memref<12x32x8xf32, #tpu.memory_space<vmem>>, vector<1x32x8xf32>
    %87 = vector.shape_cast %86 : vector<1x32x8xf32> to vector<32x8xf32>
    %cst_73 = arith.constant dense<0.000000e+00> : vector<16x8xf32>
    %88 = tpu.matmul %25, %87, %cst_73 {dimension_numbers = #tpu.dot_dimension_numbers<[1], [0], [0], [1], [0, 0, 1, 1], [], []>} : vector<16x32xf32>, vector<32x8xf32>, vector<16x8xf32> -> vector<16x8xf32>
    %c6_74 = arith.constant 6 : index
    %c0_75 = arith.constant 0 : index
    %c0_76 = arith.constant 0 : index
    %89 = vector.load %arg6[%c6_74, %c0_75, %c0_76] : memref<12x1x8xf32, #tpu.memory_space<vmem>>, vector<1x1x8xf32>
    %90 = vector.shape_cast %89 : vector<1x1x8xf32> to vector<1x8xf32>
    %91 = vector.broadcast %90 : vector<1x8xf32> to vector<16x8xf32>
    %92 = arith.addf %88, %91 : vector<16x8xf32>
    %c6_77 = arith.constant 6 : index
    %c0_78 = arith.constant 0 : index
    %c0_79 = arith.constant 0 : index
    %c0_80 = arith.constant 0 : index
    %93 = vector.load %arg7[%c6_77, %c0_78, %c0_79, %c0_80] : memref<12x1x16x8xf32, #tpu.memory_space<vmem>>, vector<1x1x16x8xf32>
    %94 = vector.shape_cast %93 : vector<1x1x16x8xf32> to vector<16x8xf32>
    %95 = vector.shape_cast %92 : vector<16x8xf32> to vector<1x1x16x8xf32>
    tpu.vector_store %arg7[%c6_77, %c0_78, %c0_79, %c0_80], %95 {strides = array<i32>} : memref<12x1x16x8xf32, #tpu.memory_space<vmem>>, vector<1x1x16x8xf32>,
    %c7 = arith.constant 7 : index
    %c0_81 = arith.constant 0 : index
    %c0_82 = arith.constant 0 : index
    %96 = vector.load %arg5[%c7, %c0_81, %c0_82] : memref<12x32x8xf32, #tpu.memory_space<vmem>>, vector<1x32x8xf32>
    %97 = vector.shape_cast %96 : vector<1x32x8xf32> to vector<32x8xf32>
    %cst_83 = arith.constant dense<0.000000e+00> : vector<16x8xf32>
    %98 = tpu.matmul %25, %97, %cst_83 {dimension_numbers = #tpu.dot_dimension_numbers<[1], [0], [0], [1], [0, 0, 1, 1], [], []>} : vector<16x32xf32>, vector<32x8xf32>, vector<16x8xf32> -> vector<16x8xf32>
    %c7_84 = arith.constant 7 : index
    %c0_85 = arith.constant 0 : index
    %c0_86 = arith.constant 0 : index
    %99 = vector.load %arg6[%c7_84, %c0_85, %c0_86] : memref<12x1x8xf32, #tpu.memory_space<vmem>>, vector<1x1x8xf32>
    %100 = vector.shape_cast %99 : vector<1x1x8xf32> to vector<1x8xf32>
    %101 = vector.broadcast %100 : vector<1x8xf32> to vector<16x8xf32>
    %102 = arith.addf %98, %101 : vector<16x8xf32>
    %c7_87 = arith.constant 7 : index
    %c0_88 = arith.constant 0 : index
    %c0_89 = arith.constant 0 : index
    %c0_90 = arith.constant 0 : index
    %103 = vector.load %arg7[%c7_87, %c0_88, %c0_89, %c0_90] : memref<12x1x16x8xf32, #tpu.memory_space<vmem>>, vector<1x1x16x8xf32>
    %104 = vector.shape_cast %103 : vector<1x1x16x8xf32> to vector<16x8xf32>
    %105 = vector.shape_cast %102 : vector<16x8xf32> to vector<1x1x16x8xf32>
    tpu.vector_store %arg7[%c7_87, %c0_88, %c0_89, %c0_90], %105 {strides = array<i32>} : memref<12x1x16x8xf32, #tpu.memory_space<vmem>>, vector<1x1x16x8xf32>,
    %c8 = arith.constant 8 : index
    %c0_91 = arith.constant 0 : index
    %c0_92 = arith.constant 0 : index
    %106 = vector.load %arg5[%c8, %c0_91, %c0_92] : memref<12x32x8xf32, #tpu.memory_space<vmem>>, vector<1x32x8xf32>
    %107 = vector.shape_cast %106 : vector<1x32x8xf32> to vector<32x8xf32>
    %cst_93 = arith.constant dense<0.000000e+00> : vector<16x8xf32>
    %108 = tpu.matmul %25, %107, %cst_93 {dimension_numbers = #tpu.dot_dimension_numbers<[1], [0], [0], [1], [0, 0, 1, 1], [], []>} : vector<16x32xf32>, vector<32x8xf32>, vector<16x8xf32> -> vector<16x8xf32>
    %c8_94 = arith.constant 8 : index
    %c0_95 = arith.constant 0 : index
    %c0_96 = arith.constant 0 : index
    %109 = vector.load %arg6[%c8_94, %c0_95, %c0_96] : memref<12x1x8xf32, #tpu.memory_space<vmem>>, vector<1x1x8xf32>
    %110 = vector.shape_cast %109 : vector<1x1x8xf32> to vector<1x8xf32>
    %111 = vector.broadcast %110 : vector<1x8xf32> to vector<16x8xf32>
    %112 = arith.addf %108, %111 : vector<16x8xf32>
    %c8_97 = arith.constant 8 : index
    %c0_98 = arith.constant 0 : index
    %c0_99 = arith.constant 0 : index
    %c0_100 = arith.constant 0 : index
    %113 = vector.load %arg7[%c8_97, %c0_98, %c0_99, %c0_100] : memref<12x1x16x8xf32, #tpu.memory_space<vmem>>, vector<1x1x16x8xf32>
    %114 = vector.shape_cast %113 : vector<1x1x16x8xf32> to vector<16x8xf32>
    %115 = vector.shape_cast %112 : vector<16x8xf32> to vector<1x1x16x8xf32>
    tpu.vector_store %arg7[%c8_97, %c0_98, %c0_99, %c0_100], %115 {strides = array<i32>} : memref<12x1x16x8xf32, #tpu.memory_space<vmem>>, vector<1x1x16x8xf32>,
    %c9 = arith.constant 9 : index
    %c0_101 = arith.constant 0 : index
    %c0_102 = arith.constant 0 : index
    %116 = vector.load %arg5[%c9, %c0_101, %c0_102] : memref<12x32x8xf32, #tpu.memory_space<vmem>>, vector<1x32x8xf32>
    %117 = vector.shape_cast %116 : vector<1x32x8xf32> to vector<32x8xf32>
    %cst_103 = arith.constant dense<0.000000e+00> : vector<16x8xf32>
    %118 = tpu.matmul %25, %117, %cst_103 {dimension_numbers = #tpu.dot_dimension_numbers<[1], [0], [0], [1], [0, 0, 1, 1], [], []>} : vector<16x32xf32>, vector<32x8xf32>, vector<16x8xf32> -> vector<16x8xf32>
    %c9_104 = arith.constant 9 : index
    %c0_105 = arith.constant 0 : index
    %c0_106 = arith.constant 0 : index
    %119 = vector.load %arg6[%c9_104, %c0_105, %c0_106] : memref<12x1x8xf32, #tpu.memory_space<vmem>>, vector<1x1x8xf32>
    %120 = vector.shape_cast %119 : vector<1x1x8xf32> to vector<1x8xf32>
    %121 = vector.broadcast %120 : vector<1x8xf32> to vector<16x8xf32>
    %122 = arith.addf %118, %121 : vector<16x8xf32>
    %c9_107 = arith.constant 9 : index
    %c0_108 = arith.constant 0 : index
    %c0_109 = arith.constant 0 : index
    %c0_110 = arith.constant 0 : index
    %123 = vector.load %arg7[%c9_107, %c0_108, %c0_109, %c0_110] : memref<12x1x16x8xf32, #tpu.memory_space<vmem>>, vector<1x1x16x8xf32>
    %124 = vector.shape_cast %123 : vector<1x1x16x8xf32> to vector<16x8xf32>
    %125 = vector.shape_cast %122 : vector<16x8xf32> to vector<1x1x16x8xf32>
    tpu.vector_store %arg7[%c9_107, %c0_108, %c0_109, %c0_110], %125 {strides = array<i32>} : memref<12x1x16x8xf32, #tpu.memory_space<vmem>>, vector<1x1x16x8xf32>,
    %c10 = arith.constant 10 : index
    %c0_111 = arith.constant 0 : index
    %c0_112 = arith.constant 0 : index
    %126 = vector.load %arg5[%c10, %c0_111, %c0_112] : memref<12x32x8xf32, #tpu.memory_space<vmem>>, vector<1x32x8xf32>
    %127 = vector.shape_cast %126 : vector<1x32x8xf32> to vector<32x8xf32>
    %cst_113 = arith.constant dense<0.000000e+00> : vector<16x8xf32>
    %128 = tpu.matmul %25, %127, %cst_113 {dimension_numbers = #tpu.dot_dimension_numbers<[1], [0], [0], [1], [0, 0, 1, 1], [], []>} : vector<16x32xf32>, vector<32x8xf32>, vector<16x8xf32> -> vector<16x8xf32>
    %c10_114 = arith.constant 10 : index
    %c0_115 = arith.constant 0 : index
    %c0_116 = arith.constant 0 : index
    %129 = vector.load %arg6[%c10_114, %c0_115, %c0_116] : memref<12x1x8xf32, #tpu.memory_space<vmem>>, vector<1x1x8xf32>
    %130 = vector.shape_cast %129 : vector<1x1x8xf32> to vector<1x8xf32>
    %131 = vector.broadcast %130 : vector<1x8xf32> to vector<16x8xf32>
    %132 = arith.addf %128, %131 : vector<16x8xf32>
    %c10_117 = arith.constant 10 : index
    %c0_118 = arith.constant 0 : index
    %c0_119 = arith.constant 0 : index
    %c0_120 = arith.constant 0 : index
    %133 = vector.load %arg7[%c10_117, %c0_118, %c0_119, %c0_120] : memref<12x1x16x8xf32, #tpu.memory_space<vmem>>, vector<1x1x16x8xf32>
    %134 = vector.shape_cast %133 : vector<1x1x16x8xf32> to vector<16x8xf32>
    %135 = vector.shape_cast %132 : vector<16x8xf32> to vector<1x1x16x8xf32>
    tpu.vector_store %arg7[%c10_117, %c0_118, %c0_119, %c0_120], %135 {strides = array<i32>} : memref<12x1x16x8xf32, #tpu.memory_space<vmem>>, vector<1x1x16x8xf32>,
    %c11 = arith.constant 11 : index
    %c0_121 = arith.constant 0 : index
    %c0_122 = arith.constant 0 : index
    %136 = vector.load %arg5[%c11, %c0_121, %c0_122] : memref<12x32x8xf32, #tpu.memory_space<vmem>>, vector<1x32x8xf32>
    %137 = vector.shape_cast %136 : vector<1x32x8xf32> to vector<32x8xf32>
    %cst_123 = arith.constant dense<0.000000e+00> : vector<16x8xf32>
    %138 = tpu.matmul %25, %137, %cst_123 {dimension_numbers = #tpu.dot_dimension_numbers<[1], [0], [0], [1], [0, 0, 1, 1], [], []>} : vector<16x32xf32>, vector<32x8xf32>, vector<16x8xf32> -> vector<16x8xf32>
    %c11_124 = arith.constant 11 : index
    %c0_125 = arith.constant 0 : index
    %c0_126 = arith.constant 0 : index
    %139 = vector.load %arg6[%c11_124, %c0_125, %c0_126] : memref<12x1x8xf32, #tpu.memory_space<vmem>>, vector<1x1x8xf32>
    %140 = vector.shape_cast %139 : vector<1x1x8xf32> to vector<1x8xf32>
    %141 = vector.broadcast %140 : vector<1x8xf32> to vector<16x8xf32>
    %142 = arith.addf %138, %141 : vector<16x8xf32>
    %c11_127 = arith.constant 11 : index
    %c0_128 = arith.constant 0 : index
    %c0_129 = arith.constant 0 : index
    %c0_130 = arith.constant 0 : index
    %143 = vector.load %arg7[%c11_127, %c0_128, %c0_129, %c0_130] : memref<12x1x16x8xf32, #tpu.memory_space<vmem>>, vector<1x1x16x8xf32>
    %144 = vector.shape_cast %143 : vector<1x1x16x8xf32> to vector<16x8xf32>
    %145 = vector.shape_cast %142 : vector<16x8xf32> to vector<1x1x16x8xf32>
    tpu.vector_store %arg7[%c11_127, %c0_128, %c0_129, %c0_130], %145 {strides = array<i32>} : memref<12x1x16x8xf32, #tpu.memory_space<vmem>>, vector<1x1x16x8xf32>,
    return
  }
  func.func @transform_0(%arg0: i32, %arg1: i32) -> (i32, i32, i32) {
    %c0_i32 = arith.constant 0 : i32
    %c0_i32_0 = arith.constant 0 : i32
    return %arg0, %arg1, %c0_i32 : i32, i32, i32
  }
  func.func @transform_1(%arg0: i32, %arg1: i32) -> (i32, i32) {
    %c0_i32 = arith.constant 0 : i32
    %c0_i32_0 = arith.constant 0 : i32
    %c0_i32_1 = arith.constant 0 : i32
    return %c0_i32, %c0_i32_0 : i32, i32
  }
  func.func @transform_2(%arg0: i32, %arg1: i32) -> (i32, i32) {
    %c0_i32 = arith.constant 0 : i32
    %c0_i32_0 = arith.constant 0 : i32
    %c0_i32_1 = arith.constant 0 : i32
    return %c0_i32, %c0_i32_0 : i32, i32
  }
  func.func @transform_3(%arg0: i32, %arg1: i32) -> (i32, i32, i32) {
    %c0_i32 = arith.constant 0 : i32
    %c0_i32_0 = arith.constant 0 : i32
    %c0_i32_1 = arith.constant 0 : i32
    %c0_i32_2 = arith.constant 0 : i32
    return %c0_i32, %c0_i32_0, %c0_i32_1 : i32, i32, i32
  }
  func.func @transform_4(%arg0: i32, %arg1: i32) -> (i32, i32, i32) {
    %c0_i32 = arith.constant 0 : i32
    %c0_i32_0 = arith.constant 0 : i32
    %c0_i32_1 = arith.constant 0 : i32
    %c0_i32_2 = arith.constant 0 : i32
    return %c0_i32, %c0_i32_0, %c0_i32_1 : i32, i32, i32
  }
  func.func @transform_5(%arg0: i32, %arg1: i32) -> (i32, i32, i32, i32) {
    %c0_i32 = arith.constant 0 : i32
    %c0_i32_0 = arith.constant 0 : i32
    %c0_i32_1 = arith.constant 0 : i32
    return %c0_i32, %arg0, %arg1, %c0_i32_0 : i32, i32, i32, i32
  }
}

</mosaic_0001>

<bundles_post_ra>
// kernel: tpu_custom_call.1
= control target key start
LH: loop header
LB: loop body
LE: loop exit
PB: predicated region body
PF: predicated region fallthrough
CT: control target
= control target key end

     0   :  { %s2046_s18 = smov 0   ;;  %s2048_s19 = smov 0   ;;  %s2458_s0 = inlined_call_operand.vmem [shape: f32[2,16,32], index: 0, kind: input, shape index: {}]   ;;  %s2459_s1 = inlined_call_operand.vmem [shape: f32[1,32], index: 1, kind: input, shape index: {}]   ;;  %s2460_s2 = inlined_call_operand.vmem [shape: f32[1,32], index: 2, kind: input, shape index: {}]   ;;  %s2461_s3 = inlined_call_operand.vmem [shape: f32[12,32,8], index: 3, kind: input, shape index: {}]   ;;  %s2462_s4 = inlined_call_operand.vmem [shape: f32[12,1,8], index: 4, kind: input, shape index: {}]   ;;  %s2463_s5 = inlined_call_operand.vmem [shape: f32[12,2,16,8], index: 5, kind: output, shape index: {}]  }
   0x1   :  { %s2050_s20 = smov 0   ;;  %s2052_s21 = smov 0  }
   0x2   :  { %s2054_s22 = smov 0  }
   0x3 LB: > { %s1599_s23 = sadd.s32 4294967295, %s2014_s22   ;;  %s27_s24 = sadd.s32 1, %s2010_s21  ;;  %s2014_s22 = sphi %s2054_s22, %s15_s22   ;;  %s2010_s21 = sphi %s2052_s21, %s2468_s21   ;;  %s2006_s20 = sphi %s2050_s20, %s2467_s20   ;;  %s2002_s19 = sphi %s2048_s19, %s2466_s19   ;;  %s1998_s18 = sphi %s2046_s18, %s2465_s18  }
   0x4   : > { %p29_p0 = scmp.ge.s32.totalorder %s27_s24, 2  ;;  %s148_s25 = sadd.s32 1, %s2002_s19 }
   0x5   : > { %p158_p1 = scmp.ne.s32.totalorder %s2002_s19, %s1998_s18  ;;  %p159_p2 = scmp.eq.s32.totalorder %s1599_s23, 1 }
   0x6   : > { %s2470_s24 = smov (%p29_p0, %s27_s24), 0  ;;  %p1603_p4 = scmp.ge.s32.totalorder %s2014_s22, 1 }
   0x7   : > { %p2078_p3 = por %p159_p2, %p158_p1  ;;  %s143_s27 = ssub.s32 %s2010_s21, %s2470_s24 }
   0x8   : > { %p208_p5 = scmp.lt.s32.totalorder %s2014_s22, 3  ;;  %p146_p6 = scmp.eq.s32.totalorder %s143_s27, 0 }
   0xa   : > { %p209_p7 = pnand %p1603_p4, %p208_p5 }
   0xb   : > { %s2087_s28 = scalar_select %p146_p6, %s2002_s19, %s148_s25  }
   0xc   : > { %212 = sbr.rel (%p209_p7) target bundleno = 589 (0x24d), region = 40  ;;  %p240_p8 = scmp.lt.s32.totalorder (!%p209_p7), %s2006_s20, 1 }
   0xd   : > { %s236_s7 = sand.u32 (!%p209_p7), 1, %s1998_s18  }
  0x11   : > { %s241_s29 = scalar_select %p240_p8, %s2006_s20, 1  ;;  %vm252_vm0 = vcmask 261120   ;;  %v301_v14 = vld [vmem:[%s2461_s3 + $0x18] sm:$0xff]  ;;  %v300_v16 = vld [vmem:[%s2461_s3 + $0x10] sm:$0xff]  ;;  %v299_v18 = vld [vmem:[%s2461_s3 + $0x8] sm:$0xff]  ;;  %vm390_vm1 = vcmask 64512  }
  0x12   : > { %v1614_v15 = vld [vmem:[%s2461_s3 + $0x38] sm:$0xff]  ;;  %1799 = vmatprep.subr.mxu0 %v301_v14  ;;  %v1613_v17 = vld [vmem:[%s2461_s3 + $0x30] sm:$0xff]  ;;  %v1612_v19 = vld [vmem:[%s2461_s3 + $0x28] sm:$0xff]  ;;  %s1726_s16 = sshll.u32 (%p2078_p3), %s2006_s20, 4 }
  0x13   : > { %s1725_s30 = sshll.u32 %s241_s29, 4  ;;  %1810 = vmatprep.subr.mxu1 %v1614_v15  ;;  %1800 = vmatpush3.msra.mxu0 %v301_v14  ;;  %v298_v20 = vld [vmem:[%s2461_s3] sm:$0xff]  ;;  %v1624_v22 = vld [vmem:[%s2461_s3 + $0x58] sm:$0xff]  ;;  %v1623_v40 = vld [vmem:[%s2461_s3 + $0x50] sm:$0xff]  ;;  %s2396_s25 = scalar_lea.vmem (%p2078_p3), %s2463_s5, %s1726_s16 }
  0x14   : > { %s247_s8 = scalar_lea.vmem %s2458_s0, %s1725_s30  ;;  %1811 = vmatpush3.msra.mxu1 %v1614_v15  ;;  %1801 = vmatprep.subr.mxu0 %v300_v16  ;;  %v1611_v21 = vld [vmem:[%s2461_s3 + $0x20] sm:$0xff]  ;;  %v1634_v23 = vld [vmem:[%s2461_s3 + $0x78] sm:$0xff]  ;;  %v1633_v41 = vld [vmem:[%s2461_s3 + $0x70] sm:$0xff] }
  0x15   : > { %v250_v0 = vld [vmem:[%s247_s8] sm:$0xff]  ;;  %v251_v1 = vld [vmem:[%s247_s8 + $0x8] sm:$0xff]  ;;  %1812 = vmatprep.subr.mxu1 %v1613_v17  ;;  %1802 = vmatpush3.msra.mxu0 %v300_v16  ;;  %v1644_v46 = vld [vmem:[%s2461_s3 + $0x98] sm:$0xff]  ;;  %s1931_s8 = smul.u32 192, %s236_s7 }
  0x16   : > { %v253_v2 = vsel %vm252_vm0, %v250_v0, 0.0  ;;  %v256_v3 = vsel %vm252_vm0, %v251_v1, 0.0  ;;  %1813 = vmatpush3.msra.mxu1 %v1613_v17  ;;  %1803 = vmatprep.subr.mxu0 %v299_v18  ;;  %v1606_v31 = vld [vmem:[%s2459_s1] ss:$0 sm:$0xff]  ;;  %v1622_v42 = vld [vmem:[%s2461_s3 + $0x48] sm:$0xff]  ;;  %v1654_v47 = vld [vmem:[%s2461_s3 + $0xb8] sm:$0xff] }
  0x17   : > { %254 = vadd.xlane.f32.xlu0 %v253_v2  ;;  %1814 = vmatprep.subr.mxu1 %v1612_v19  ;;  %v1607_v33 = vld [vmem:[%s2460_s2] ss:$0 sm:$0xff]  ;;  %v1632_v43 = vld [vmem:[%s2461_s3 + $0x68] sm:$0xff]  ;;  %v1643_v48 = vld [vmem:[%s2461_s3 + $0x90] sm:$0xff]  ;;  %s2307_s13 = scalar_lea.vmem [#allocation2], %s1931_s8 }
  0x18   : > { %1804 = vmatpush3.msra.mxu0 %v299_v18  ;;  %1815 = vmatpush3.msra.mxu1 %v1612_v19  ;;  %v1621_v44 = vld [vmem:[%s2461_s3 + $0x40] sm:$0xff]  ;;  %v1653_v49 = vld [vmem:[%s2461_s3 + $0xb0] sm:$0xff]  ;;  %v1642_v50 = vld [vmem:[%s2461_s3 + $0x88] sm:$0xff] }
  0x19   : > { %1805 = vmatprep.subr.mxu0 %v298_v20  ;;  %1816 = vmatprep.subr.mxu1 %v1611_v21  ;;  %v1631_v45 = vld [vmem:[%s2461_s3 + $0x60] sm:$0xff]  ;;  %v1652_v51 = vld [vmem:[%s2461_s3 + $0xa8] sm:$0xff]  ;;  %v1664_v54 = vld [vmem:[%s2461_s3 + $0xd8] sm:$0xff] }
  0x1a   : > { %1806 = vmatpush3.msra.mxu0 %v298_v20  ;;  %1817 = vmatpush3.msra.mxu1 %v1611_v21  ;;  %v1641_v52 = vld [vmem:[%s2461_s3 + $0x80] sm:$0xff]  ;;  %v1674_v55 = vld [vmem:[%s2461_s3 + $0xf8] sm:$0xff]  ;;  %v1663_v56 = vld [vmem:[%s2461_s3 + $0xd0] sm:$0xff] }
  0x1b   : > { %257 = vadd.xlane.f32.xlu0 %v256_v3  ;;  %1821 = vmatprep.subr.mxu0 %v1624_v22  ;;  %v1651_v53 = vld [vmem:[%s2461_s3 + $0xa0] sm:$0xff]  ;;  %v1673_v57 = vld [vmem:[%s2461_s3 + $0xf0] sm:$0xff]  ;;  %v1662_v58 = vld [vmem:[%s2461_s3 + $0xc8] sm:$0xff] }
  0x1c   : > { %1832 = vmatprep.subr.mxu1 %v1634_v23  ;;  %v1672_v59 = vld [vmem:[%s2461_s3 + $0xe8] sm:$0xff]  ;;  %v1661_v60 = vld [vmem:[%s2461_s3 + $0xc0] sm:$0xff]  ;;  %v1684_v62 = vld [vmem:[%s2461_s3 + $0x118] sm:$0xff] }
  0x1d   : > { %v1671_v61 = vld [vmem:[%s2461_s3 + $0xe0] sm:$0xff]  ;;  %v1694_v63 = vld [vmem:[%s2461_s3 + $0x138] sm:$0xff]  ;;  %v1682_v2 = vld [vmem:[%s2461_s3 + $0x108] sm:$0xff] }
  0x1e   : > { %v1692_v3 = vld [vmem:[%s2461_s3 + $0x128] sm:$0xff]  ;;  %v1608_v14 = vld [vmem:[%s2462_s4] ss:$0 sm:$0xff]  ;;  %v1616_v15 = vld [vmem:[%s2462_s4 + $0x1] ss:$0 sm:$0xff] }
  0xa0   : > { %v255_v4 = vpop.xlane.xlu0 %254 }
  0xa1   : > { %v260_v5 = vmul.f32 0.03125, %v255_v4  ;;  %v1681_v4 = vld [vmem:[%s2461_s3 + $0x100] sm:$0xff] }
  0xa3   : > { %v262_v6 = vsub.f32 %v250_v0, %v260_v5  ;;  %v1683_v0 = vld [vmem:[%s2461_s3 + $0x110] sm:$0xff]  ;;  %v1691_v5 = vld [vmem:[%s2461_s3 + $0x120] sm:$0xff] }
  0xa4   : > { %v258_v7 = vpop.xlane.xlu0 %257 }
  0xa5   : > { %v261_v8 = vmul.f32 0.03125, %v258_v7  ;;  %v264_v9 = vmul.f32 %v262_v6, %v262_v6  ;;  %v1714_v7 = vld [vmem:[%s2461_s3 + $0x178] sm:$0xff] }
  0xa7   : > { %v263_v10 = vsub.f32 %v251_v1, %v261_v8  ;;  %v266_v11 = vsel %vm252_vm0, %v264_v9, 0.0  ;;  %v1693_v1 = vld [vmem:[%s2461_s3 + $0x130] sm:$0xff] }
  0xa8   : > { %267 = vadd.xlane.f32.xlu1 %v266_v11  ;;  %v1703_v8 = vld [vmem:[%s2461_s3 + $0x150] sm:$0xff]  ;;  %v1712_v11 = vld [vmem:[%s2461_s3 + $0x168] sm:$0xff] }
  0xa9   : > { %v265_v12 = vmul.f32 %v263_v10, %v263_v10  ;;  %v1713_v9 = vld [vmem:[%s2461_s3 + $0x170] sm:$0xff] }
  0xab   : > { %v269_v13 = vsel %vm252_vm0, %v265_v12, 0.0  ;;  %v1701_v12 = vld [vmem:[%s2461_s3 + $0x140] sm:$0xff] }
  0xac   : > { %270 = vadd.xlane.f32.xlu1 %v269_v13  ;;  %v1711_v13 = vld [vmem:[%s2461_s3 + $0x160] sm:$0xff] }
 0x131   : > { %v268_v24 = vpop.xlane.xlu1 %267 }
 0x132   : > { %v272_v25 = vmul.f32 0.03125, %v268_v24  ;;  %v1626_v24 = vld [vmem:[%s2462_s4 + $0x2] ss:$0 sm:$0xff] }
 0x134   : > { %v274_v26 = vadd.f32 1e-06, %v272_v25  ;;  %v1636_v25 = vld [vmem:[%s2462_s4 + $0x3] ss:$0 sm:$0xff] }
 0x135   : > { %v271_v27 = vpop.xlane.xlu1 %270 }
 0x136   : > { %1972 = vrsqrt.f32 %v274_v26  ;;  %v273_v28 = vmul.f32 0.03125, %v271_v27 }
 0x138   : > { %v275_v29 = vadd.f32 1e-06, %v273_v28 }
 0x13a   : > { %1974 = vrsqrt.f32 %v275_v29 }
 0x143   : > { %v1973_v30 = vpop.eup %1972 }
 0x144   : > { %v278_v32 = vmul.f32 %v1973_v30, %v262_v6  ;;  %v1704_v6 = vld [vmem:[%s2461_s3 + $0x158] sm:$0xff] }
 0x146   : > { %v287_v34 = vmul.f32 %v1606_v31, %v278_v32 }
 0x147   : > { %v1975_v35 = vpop.eup %1974 }
 0x148   : > { %v2134_v36 = vadd.f32 %v1607_v33, %v287_v34  ;;  %v279_v37 = vmul.f32 %v1975_v35, %v263_v10  ;;  %v1702_v10 = vld [vmem:[%s2461_s3 + $0x148] sm:$0xff]  ;;  %v1646_v34 = vld [vmem:[%s2462_s4 + $0x4] ss:$0 sm:$0xff]  ;;  %v1656_v35 = vld [vmem:[%s2462_s4 + $0x5] ss:$0 sm:$0xff] }
 0x14a   : > { %v288_v38 = vmul.f32 %v1606_v31, %v279_v37  ;;  %1807 = vmatprep.mubr.msk.f32.mxu0 %vm252_vm0, %v2134_v36  ;;  %1818 = vmatprep.mubr.msk.f32.mxu1 %vm252_vm0, %v2134_v36 }
 0x14c   : > { %v2140_v39 = vadd.f32 %v1607_v33, %v288_v38 }
 0x14e   : > { %1808 = vmatmul.mubr.msk.f32.vlgmr.msra.gmra.mxu0 %vm252_vm0, %v2140_v39  ;;  %1819 = vmatmul.mubr.msk.f32.vlgmr.msra.gmra.mxu1 %vm252_vm0, %v2140_v39 }
 0x14f   : > { %1822 = vmatpush3.msra.mxu0 %v1624_v22  ;;  %1833 = vmatpush3.msra.mxu1 %v1634_v23 }
 0x150   : > { %1823 = vmatprep.subr.mxu0 %v1623_v40  ;;  %1829 = vmatprep.mubr.msk.f32.mxu0 %vm252_vm0, %v2134_v36 }
 0x151   : > { %1834 = vmatprep.subr.mxu1 %v1633_v41  ;;  %1840 = vmatprep.mubr.msk.f32.mxu1 %vm252_vm0, %v2134_v36 }
 0x152   : > { %1824 = vmatpush3.msra.mxu0 %v1623_v40  ;;  %1835 = vmatpush3.msra.mxu1 %v1633_v41 }
 0x153   : > { %1825 = vmatprep.subr.mxu0 %v1622_v42  ;;  %1836 = vmatprep.subr.mxu1 %v1632_v43 }
 0x154   : > { %1826 = vmatpush3.msra.mxu0 %v1622_v42  ;;  %1837 = vmatpush3.msra.mxu1 %v1632_v43 }
 0x155   : > { %1827 = vmatprep.subr.mxu0 %v1621_v44  ;;  %1838 = vmatprep.subr.mxu1 %v1631_v45 }
 0x156   : > { %1828 = vmatpush3.msra.mxu0 %v1621_v44  ;;  %1839 = vmatpush3.msra.mxu1 %v1631_v45  ;;  %v1666_v44 = vld [vmem:[%s2462_s4 + $0x6] ss:$0 sm:$0xff]  ;;  %v1676_v45 = vld [vmem:[%s2462_s4 + $0x7] ss:$0 sm:$0xff] }
 0x157   : > { %1830 = vmatmul.mubr.msk.f32.vlgmr.msra.gmra.mxu0 %vm252_vm0, %v2140_v39  ;;  %1841 = vmatmul.mubr.msk.f32.vlgmr.msra.gmra.mxu1 %vm252_vm0, %v2140_v39 }
 0x158   : > { %1843 = vmatprep.subr.mxu0 %v1644_v46  ;;  %1854 = vmatprep.subr.mxu1 %v1654_v47 }
 0x159   : > { %1844 = vmatpush3.msra.mxu0 %v1644_v46  ;;  %1851 = vmatprep.mubr.msk.f32.mxu0 %vm252_vm0, %v2134_v36 }
 0x15a   : > { %1855 = vmatpush3.msra.mxu1 %v1654_v47  ;;  %1862 = vmatprep.mubr.msk.f32.mxu1 %vm252_vm0, %v2134_v36 }
 0x15b   : > { %1845 = vmatprep.subr.mxu0 %v1643_v48  ;;  %1856 = vmatprep.subr.mxu1 %v1653_v49 }
 0x15c   : > { %1846 = vmatpush3.msra.mxu0 %v1643_v48  ;;  %1857 = vmatpush3.msra.mxu1 %v1653_v49 }
 0x15d   : > { %1847 = vmatprep.subr.mxu0 %v1642_v50  ;;  %1858 = vmatprep.subr.mxu1 %v1652_v51 }
 0x15e   : > { %1848 = vmatpush3.msra.mxu0 %v1642_v50  ;;  %1859 = vmatpush3.msra.mxu1 %v1652_v51 }
 0x15f   : > { %1849 = vmatprep.subr.mxu0 %v1641_v52  ;;  %1860 = vmatprep.subr.mxu1 %v1651_v53 }
 0x160   : > { %1850 = vmatpush3.msra.mxu0 %v1641_v52  ;;  %1861 = vmatpush3.msra.mxu1 %v1651_v53 }
 0x161   : > { %1852 = vmatmul.mubr.msk.f32.vlgmr.msra.gmra.mxu0 %vm252_vm0, %v2140_v39  ;;  %1863 = vmatmul.mubr.msk.f32.vlgmr.msra.gmra.mxu1 %vm252_vm0, %v2140_v39 }
 0x162   : > { %1865 = vmatprep.subr.mxu0 %v1664_v54  ;;  %1876 = vmatprep.subr.mxu1 %v1674_v55 }
 0x163   : > { %1866 = vmatpush3.msra.mxu0 %v1664_v54  ;;  %1873 = vmatprep.mubr.msk.f32.mxu0 %vm252_vm0, %v2134_v36  ;;  %v1686_v54 = vld [vmem:[%s2462_s4 + $0x8] ss:$0 sm:$0xff] }
 0x164   : > { %1877 = vmatpush3.msra.mxu1 %v1674_v55  ;;  %1884 = vmatprep.mubr.msk.f32.mxu1 %vm252_vm0, %v2134_v36  ;;  %v1696_v55 = vld [vmem:[%s2462_s4 + $0x9] ss:$0 sm:$0xff] }
 0x165   : > { %1867 = vmatprep.subr.mxu0 %v1663_v56  ;;  %1878 = vmatprep.subr.mxu1 %v1673_v57 }
 0x166   : > { %1868 = vmatpush3.msra.mxu0 %v1663_v56  ;;  %1879 = vmatpush3.msra.mxu1 %v1673_v57 }
 0x167   : > { %1869 = vmatprep.subr.mxu0 %v1662_v58  ;;  %1880 = vmatprep.subr.mxu1 %v1672_v59 }
 0x168   : > { %1870 = vmatpush3.msra.mxu0 %v1662_v58  ;;  %1881 = vmatpush3.msra.mxu1 %v1672_v59 }
 0x169   : > { %1871 = vmatprep.subr.mxu0 %v1661_v60  ;;  %1882 = vmatprep.subr.mxu1 %v1671_v61 }
 0x16a   : > { %1872 = vmatpush3.msra.mxu0 %v1661_v60  ;;  %1883 = vmatpush3.msra.mxu1 %v1671_v61 }
 0x16b   : > { %1874 = vmatmul.mubr.msk.f32.vlgmr.msra.gmra.mxu0 %vm252_vm0, %v2140_v39  ;;  %1885 = vmatmul.mubr.msk.f32.vlgmr.msra.gmra.mxu1 %vm252_vm0, %v2140_v39 }
 0x16c   : > { %1887 = vmatprep.subr.mxu0 %v1684_v62  ;;  %1898 = vmatprep.subr.mxu1 %v1694_v63 }
 0x16d   : > { %1888 = vmatpush3.msra.mxu0 %v1684_v62  ;;  %1895 = vmatprep.mubr.msk.f32.mxu0 %vm252_vm0, %v2134_v36 }
 0x16e   : > { %1899 = vmatpush3.msra.mxu1 %v1694_v63  ;;  %1906 = vmatprep.mubr.msk.f32.mxu1 %vm252_vm0, %v2134_v36 }
 0x16f   : > { %1889 = vmatprep.subr.mxu0 %v1683_v0  ;;  %1900 = vmatprep.subr.mxu1 %v1693_v1 }
 0x170   : > { %1890 = vmatpush3.msra.mxu0 %v1683_v0  ;;  %1901 = vmatpush3.msra.mxu1 %v1693_v1  ;;  %v1706_v0 = vld [vmem:[%s2462_s4 + $0xa] ss:$0 sm:$0xff]  ;;  %v1716_v1 = vld [vmem:[%s2462_s4 + $0xb] ss:$0 sm:$0xff] }
 0x171   : > { %1891 = vmatprep.subr.mxu0 %v1682_v2  ;;  %1902 = vmatprep.subr.mxu1 %v1692_v3 }
 0x172   : > { %1892 = vmatpush3.msra.mxu0 %v1682_v2  ;;  %1903 = vmatpush3.msra.mxu1 %v1692_v3 }
 0x173   : > { %1893 = vmatprep.subr.mxu0 %v1681_v4  ;;  %1904 = vmatprep.subr.mxu1 %v1691_v5 }
 0x174   : > { %1894 = vmatpush3.msra.mxu0 %v1681_v4  ;;  %1905 = vmatpush3.msra.mxu1 %v1691_v5 }
 0x175   : > { %1896 = vmatmul.mubr.msk.f32.vlgmr.msra.gmra.mxu0 %vm252_vm0, %v2140_v39  ;;  %1907 = vmatmul.mubr.msk.f32.vlgmr.msra.gmra.mxu1 %vm252_vm0, %v2140_v39 }
 0x176   : > { %1909 = vmatprep.subr.mxu0 %v1704_v6  ;;  %1920 = vmatprep.subr.mxu1 %v1714_v7 }
 0x177   : > { %1910 = vmatpush3.msra.mxu0 %v1704_v6  ;;  %1917 = vmatprep.mubr.msk.f32.mxu0 %vm252_vm0, %v2134_v36 }
 0x178   : > { %1921 = vmatpush3.msra.mxu1 %v1714_v7  ;;  %1928 = vmatprep.mubr.msk.f32.mxu1 %vm252_vm0, %v2134_v36 }
 0x179   : > { %1911 = vmatprep.subr.mxu0 %v1703_v8  ;;  %1922 = vmatprep.subr.mxu1 %v1713_v9 }
 0x17a   : > { %1912 = vmatpush3.msra.mxu0 %v1703_v8  ;;  %1923 = vmatpush3.msra.mxu1 %v1713_v9 }
 0x17b   : > { %1913 = vmatprep.subr.mxu0 %v1702_v10  ;;  %1924 = vmatprep.subr.mxu1 %v1712_v11 }
 0x17c   : > { %1914 = vmatpush3.msra.mxu0 %v1702_v10  ;;  %1925 = vmatpush3.msra.mxu1 %v1712_v11 }
 0x17d   : > { %1915 = vmatprep.subr.mxu0 %v1701_v12  ;;  %1926 = vmatprep.subr.mxu1 %v1711_v13 }
 0x17e   : > { %1916 = vmatpush3.msra.mxu0 %v1701_v12  ;;  %1927 = vmatpush3.msra.mxu1 %v1711_v13 }
 0x17f   : > { %1918 = vmatmul.mubr.msk.f32.vlgmr.msra.gmra.mxu0 %vm252_vm0, %v2140_v39  ;;  %1929 = vmatmul.mubr.msk.f32.vlgmr.msra.gmra.mxu1 %vm252_vm0, %v2140_v39 }
 0x20e   : > { %v1809_v16 = vpop.f32.mrf.mxu0  ;;  %v1820_v17 = vpop.f32.mrf.mxu1 }
 0x20f   : > { %v387_v18 = vadd.f32 %v1809_v16, %v1608_v14  ;;  %v478_v19 = vadd.f32 %v1820_v17, %v1616_v15 }
 0x210   : > { %v381_v20 = vpop.f32.mrf.mxu0  ;;  %v472_v21 = vpop.f32.mrf.mxu1 }
 0x211   : > { %392 = vst.msk [vmem:[%s2307_s13 + $0x8] sm:$0xff] %vm390_vm1, %v387_v18  ;;  %1620 = vst.msk [vmem:[%s2307_s13 + $0x18] sm:$0xff] %vm390_vm1, %v478_v19  ;;  %v382_v22 = vadd.f32 %v1608_v14, %v381_v20  ;;  %v473_v23 = vadd.f32 %v1616_v15, %v472_v21 }
 0x213   : > { %391 = vst.msk [vmem:[%s2307_s13] sm:$0xff] %vm390_vm1, %v382_v22  ;;  %1619 = vst.msk [vmem:[%s2307_s13 + $0x10] sm:$0xff] %vm390_vm1, %v473_v23 }
 0x217   : > { %v1831_v26 = vpop.f32.mrf.mxu0  ;;  %v1842_v27 = vpop.f32.mrf.mxu1 }
 0x218   : > { %v569_v28 = vadd.f32 %v1831_v26, %v1626_v24  ;;  %v660_v29 = vadd.f32 %v1842_v27, %v1636_v25  ;;  %v1482_v11 = vld [vmem:[%s2307_s13 + $0x8] sm:$0xff] (%p2078_p3)  ;;  %v1486_v13 = vld [vmem:[%s2307_s13 + $0x18] sm:$0xff] (%p2078_p3) }
 0x219   : > { %v563_v30 = vpop.f32.mrf.mxu0  ;;  %v654_v31 = vpop.f32.mrf.mxu1  ;;  %1483 = vst [vmem:[%s2396_s25 + $0x8] sm:$0xff] (%p2078_p3), %v1482_v11  ;;  %1487 = vst [vmem:[%s2396_s25 + $0x28] sm:$0xff] (%p2078_p3), %v1486_v13 }
 0x21a   : > { %1630 = vst.msk [vmem:[%s2307_s13 + $0x28] sm:$0xff] %vm390_vm1, %v569_v28  ;;  %1640 = vst.msk [vmem:[%s2307_s13 + $0x38] sm:$0xff] %vm390_vm1, %v660_v29  ;;  %v564_v32 = vadd.f32 %v1626_v24, %v563_v30  ;;  %v655_v33 = vadd.f32 %v1636_v25, %v654_v31  ;;  %v1480_v10 = vld [vmem:[%s2307_s13] sm:$0xff] (%p2078_p3)  ;;  %v1484_v12 = vld [vmem:[%s2307_s13 + $0x10] sm:$0xff] (%p2078_p3) }
 0x21b   : > { %1481 = vst [vmem:[%s2396_s25] sm:$0xff] (%p2078_p3), %v1480_v10  ;;  %1485 = vst [vmem:[%s2396_s25 + $0x20] sm:$0xff] (%p2078_p3), %v1484_v12 }
 0x21c   : > { %1629 = vst.msk [vmem:[%s2307_s13 + $0x20] sm:$0xff] %vm390_vm1, %v564_v32  ;;  %1639 = vst.msk [vmem:[%s2307_s13 + $0x30] sm:$0xff] %vm390_vm1, %v655_v33 }
 0x221   : > { %v1853_v36 = vpop.f32.mrf.mxu0  ;;  %v1864_v37 = vpop.f32.mrf.mxu1  ;;  %v1490_v15 = vld [vmem:[%s2307_s13 + $0x28] sm:$0xff] (%p2078_p3)  ;;  %v1494_v17 = vld [vmem:[%s2307_s13 + $0x38] sm:$0xff] (%p2078_p3) }
 0x222   : > { %v751_v38 = vadd.f32 %v1853_v36, %v1646_v34  ;;  %v842_v39 = vadd.f32 %v1864_v37, %v1656_v35  ;;  %1491 = vst [vmem:[%s2396_s25 + $0x48] sm:$0xff] (%p2078_p3), %v1490_v15  ;;  %1495 = vst [vmem:[%s2396_s25 + $0x68] sm:$0xff] (%p2078_p3), %v1494_v17 }
 0x223   : > { %v745_v40 = vpop.f32.mrf.mxu0  ;;  %v836_v41 = vpop.f32.mrf.mxu1  ;;  %v1488_v14 = vld [vmem:[%s2307_s13 + $0x20] sm:$0xff] (%p2078_p3)  ;;  %v1492_v16 = vld [vmem:[%s2307_s13 + $0x30] sm:$0xff] (%p2078_p3) }
 0x224   : > { %1650 = vst.msk [vmem:[%s2307_s13 + $0x48] sm:$0xff] %vm390_vm1, %v751_v38  ;;  %1660 = vst.msk [vmem:[%s2307_s13 + $0x58] sm:$0xff] %vm390_vm1, %v842_v39  ;;  %v746_v42 = vadd.f32 %v1646_v34, %v745_v40  ;;  %v837_v43 = vadd.f32 %v1656_v35, %v836_v41 }
 0x225   : > { %1489 = vst [vmem:[%s2396_s25 + $0x40] sm:$0xff] (%p2078_p3), %v1488_v14  ;;  %1493 = vst [vmem:[%s2396_s25 + $0x60] sm:$0xff] (%p2078_p3), %v1492_v16 }
 0x226   : > { %1649 = vst.msk [vmem:[%s2307_s13 + $0x40] sm:$0xff] %vm390_vm1, %v746_v42  ;;  %1659 = vst.msk [vmem:[%s2307_s13 + $0x50] sm:$0xff] %vm390_vm1, %v837_v43 }
 0x22b   : > { %v1875_v46 = vpop.f32.mrf.mxu0  ;;  %v1886_v47 = vpop.f32.mrf.mxu1  ;;  %v1498_v19 = vld [vmem:[%s2307_s13 + $0x48] sm:$0xff] (%p2078_p3)  ;;  %v1502_v21 = vld [vmem:[%s2307_s13 + $0x58] sm:$0xff] (%p2078_p3) }
 0x22c   : > { %v933_v48 = vadd.f32 %v1875_v46, %v1666_v44  ;;  %v1024_v49 = vadd.f32 %v1886_v47, %v1676_v45  ;;  %1499 = vst [vmem:[%s2396_s25 + $0x88] sm:$0xff] (%p2078_p3), %v1498_v19  ;;  %1503 = vst [vmem:[%s2396_s25 + $0xa8] sm:$0xff] (%p2078_p3), %v1502_v21 }
 0x22d   : > { %v927_v50 = vpop.f32.mrf.mxu0  ;;  %v1018_v51 = vpop.f32.mrf.mxu1  ;;  %v1496_v18 = vld [vmem:[%s2307_s13 + $0x40] sm:$0xff] (%p2078_p3)  ;;  %v1500_v20 = vld [vmem:[%s2307_s13 + $0x50] sm:$0xff] (%p2078_p3) }
 0x22e   : > { %1670 = vst.msk [vmem:[%s2307_s13 + $0x68] sm:$0xff] %vm390_vm1, %v933_v48  ;;  %1680 = vst.msk [vmem:[%s2307_s13 + $0x78] sm:$0xff] %vm390_vm1, %v1024_v49  ;;  %v928_v52 = vadd.f32 %v1666_v44, %v927_v50  ;;  %v1019_v53 = vadd.f32 %v1676_v45, %v1018_v51 }
 0x22f   : > { %1497 = vst [vmem:[%s2396_s25 + $0x80] sm:$0xff] (%p2078_p3), %v1496_v18  ;;  %1501 = vst [vmem:[%s2396_s25 + $0xa0] sm:$0xff] (%p2078_p3), %v1500_v20 }
 0x230   : > { %1669 = vst.msk [vmem:[%s2307_s13 + $0x60] sm:$0xff] %vm390_vm1, %v928_v52  ;;  %1679 = vst.msk [vmem:[%s2307_s13 + $0x70] sm:$0xff] %vm390_vm1, %v1019_v53 }
 0x235   : > { %v1897_v56 = vpop.f32.mrf.mxu0  ;;  %v1908_v57 = vpop.f32.mrf.mxu1  ;;  %v1506_v23 = vld [vmem:[%s2307_s13 + $0x68] sm:$0xff] (%p2078_p3)  ;;  %v1510_v25 = vld [vmem:[%s2307_s13 + $0x78] sm:$0xff] (%p2078_p3) }
 0x236   : > { %v1115_v58 = vadd.f32 %v1897_v56, %v1686_v54  ;;  %v1206_v59 = vadd.f32 %v1908_v57, %v1696_v55  ;;  %1507 = vst [vmem:[%s2396_s25 + $0xc8] sm:$0xff] (%p2078_p3), %v1506_v23  ;;  %1511 = vst [vmem:[%s2396_s25 + $0xe8] sm:$0xff] (%p2078_p3), %v1510_v25 }
 0x237   : > { %v1109_v60 = vpop.f32.mrf.mxu0  ;;  %v1200_v61 = vpop.f32.mrf.mxu1  ;;  %v1504_v22 = vld [vmem:[%s2307_s13 + $0x60] sm:$0xff] (%p2078_p3)  ;;  %v1508_v24 = vld [vmem:[%s2307_s13 + $0x70] sm:$0xff] (%p2078_p3) }
 0x238   : > { %1690 = vst.msk [vmem:[%s2307_s13 + $0x88] sm:$0xff] %vm390_vm1, %v1115_v58  ;;  %1700 = vst.msk [vmem:[%s2307_s13 + $0x98] sm:$0xff] %vm390_vm1, %v1206_v59  ;;  %v1110_v62 = vadd.f32 %v1686_v54, %v1109_v60  ;;  %v1201_v63 = vadd.f32 %v1696_v55, %v1200_v61 }
 0x239   : > { %1505 = vst [vmem:[%s2396_s25 + $0xc0] sm:$0xff] (%p2078_p3), %v1504_v22  ;;  %1509 = vst [vmem:[%s2396_s25 + $0xe0] sm:$0xff] (%p2078_p3), %v1508_v24 }
 0x23a   : > { %1689 = vst.msk [vmem:[%s2307_s13 + $0x80] sm:$0xff] %vm390_vm1, %v1110_v62  ;;  %1699 = vst.msk [vmem:[%s2307_s13 + $0x90] sm:$0xff] %vm390_vm1, %v1201_v63 }
 0x23f   : > { %v1919_v2 = vpop.f32.mrf.mxu0  ;;  %v1930_v3 = vpop.f32.mrf.mxu1  ;;  %v1514_v27 = vld [vmem:[%s2307_s13 + $0x88] sm:$0xff] (%p2078_p3)  ;;  %v1518_v29 = vld [vmem:[%s2307_s13 + $0x98] sm:$0xff] (%p2078_p3) }
 0x240   : > { %v1297_v4 = vadd.f32 %v1919_v2, %v1706_v0  ;;  %v1388_v5 = vadd.f32 %v1930_v3, %v1716_v1  ;;  %1400 = sbr.rel (!%p2078_p3) target bundleno = 589 (0x24d), region = 44  ;;  %1515 = vst [vmem:[%s2396_s25 + $0x108] sm:$0xff] (%p2078_p3), %v1514_v27  ;;  %1519 = vst [vmem:[%s2396_s25 + $0x128] sm:$0xff] (%p2078_p3), %v1518_v29 }
 0x241   : > { %v1291_v6 = vpop.f32.mrf.mxu0  ;;  %v1382_v7 = vpop.f32.mrf.mxu1  ;;  %v1512_v26 = vld [vmem:[%s2307_s13 + $0x80] sm:$0xff] (%p2078_p3)  ;;  %v1516_v28 = vld [vmem:[%s2307_s13 + $0x90] sm:$0xff] (%p2078_p3) }
 0x242   : > { %1710 = vst.msk [vmem:[%s2307_s13 + $0xa8] sm:$0xff] %vm390_vm1, %v1297_v4  ;;  %1720 = vst.msk [vmem:[%s2307_s13 + $0xb8] sm:$0xff] %vm390_vm1, %v1388_v5  ;;  %v1292_v8 = vadd.f32 %v1706_v0, %v1291_v6  ;;  %v1383_v9 = vadd.f32 %v1716_v1, %v1382_v7 }
 0x243   : > { %1513 = vst [vmem:[%s2396_s25 + $0x100] sm:$0xff] (%p2078_p3), %v1512_v26  ;;  %1517 = vst [vmem:[%s2396_s25 + $0x120] sm:$0xff] (%p2078_p3), %v1516_v28 }
 0x244   : > { %1709 = vst.msk [vmem:[%s2307_s13 + $0xa0] sm:$0xff] %vm390_vm1, %v1292_v8  ;;  %1719 = vst.msk [vmem:[%s2307_s13 + $0xb0] sm:$0xff] %vm390_vm1, %v1383_v9 }
 0x249   : > { %v1522_v31 = vld [vmem:[%s2307_s13 + $0xa8] sm:$0xff]  ;;  %v1526_v33 = vld [vmem:[%s2307_s13 + $0xb8] sm:$0xff] }
 0x24a   : > { %1523 = vst [vmem:[%s2396_s25 + $0x148] sm:$0xff] %v1522_v31  ;;  %1527 = vst [vmem:[%s2396_s25 + $0x168] sm:$0xff] %v1526_v33 }
 0x24b   : > { %v1520_v30 = vld [vmem:[%s2307_s13 + $0xa0] sm:$0xff]  ;;  %v1524_v32 = vld [vmem:[%s2307_s13 + $0xb0] sm:$0xff] }
 0x24c   : > { %1521 = vst [vmem:[%s2396_s25 + $0x140] sm:$0xff] %v1520_v30  ;;  %1525 = vst [vmem:[%s2396_s25 + $0x160] sm:$0xff] %v1524_v32 }
 0x24d PF: > { %s15_s22 = sadd.s32 1, %s2014_s22   ;;  %s2465_s18 = smov %s2002_s19 }
 0x24e   : > { %p12_p9 = scmp.ge.s32.totalorder %s15_s22, 4   ;;  %s2466_s19 = smov %s2087_s28 }
 0x24f   : > { %s2467_s20 = smov %s2010_s21  ;;  %s2468_s21 = smov %s2470_s24 }
 0x250   :  { %14 = sbr.rel (!%p12_p9) target bundleno = 3 (0x3), region = 141 }

</bundles_post_ra>
